<compile_context>
chip_gen: v7x
topology: tpu7x:2x2x1
jax: 0.10.0
libtpu: 0.0.40
codegen_flags: <defaults>
</compile_context>

<pallas_src>
import functools

import jax
import jax.numpy as jnp
from jax.experimental import pallas as pl
from jax.experimental.pallas import tpu as pltpu


# ----------------------------------------------------------------------------
# Lane-roll helper: jnp.roll convention  out[..., c] = arr[..., (c - amount) % W]
# Implemented with pltpu.roll (XLU) when available; slice+concat fallback.
# ----------------------------------------------------------------------------
def _lane_roll(arr, amount, roll_mode):
    width = arr.shape[-1]
    amount = amount % width
    if amount == 0:
        return arr
    axis = arr.ndim - 1
    if roll_mode == "roll":
        return pltpu.roll(arr, shift=amount, axis=axis)
    if roll_mode == "roll_neg":  # pltpu.roll uses the opposite sign convention
        return pltpu.roll(arr, shift=width - amount, axis=axis)
    # Fallback (always lowers, proven in the previous version of this kernel).
    return jnp.concatenate(
        [arr[..., width - amount:], arr[..., : width - amount]], axis=axis)


# ----------------------------------------------------------------------------
# Probe: detect pltpu.roll availability / sign convention once at runtime.
# ----------------------------------------------------------------------------
_ROLL_MODE_CACHE = [None]


def _probe_roll_kernel(x_ref, o_ref):
    o_ref[...] = pltpu.roll(x_ref[...], shift=1, axis=1)


def _detect_roll_mode():
    if _ROLL_MODE_CACHE[0] is not None:
        return _ROLL_MODE_CACHE[0]
    mode = "concat"
    try:
        x = jnp.arange(8 * 128, dtype=jnp.float32).reshape(8, 128)
        y = pl.pallas_call(
            _probe_roll_kernel,
            out_shape=jax.ShapeDtypeStruct((8, 128), jnp.float32),
        )(x)
        y = jax.block_until_ready(y)
        if bool(jnp.array_equal(y, jnp.roll(x, 1, axis=1))):
            mode = "roll"
        elif bool(jnp.array_equal(y, jnp.roll(x, -1, axis=1))):
            mode = "roll_neg"
    except Exception:
        mode = "concat"
    _ROLL_MODE_CACHE[0] = mode
    return mode


# ----------------------------------------------------------------------------
# Fused kernel.
# x_ref: (MB, J, O*N) f32, w_ref: (K*L, 3*J) f32, o_ref: (MB, L, O*N) f32.
# ----------------------------------------------------------------------------
def _fused_kernel(x_ref, w_ref, o_ref, *, MB, SB, N, ON, ON_pad, L, shift,
                  roll_mode):
    J = x_ref.shape[1]
    Wsub = SB * ON_pad  # lane width of one batched dot (multiple of 128)

    # roll(+/-1 over merged (o,k)) -> pair-sum -> roll(+/-1 over o) collapses to
    # "pull k=0 from o-r0, k=1 from o-r1" (circular over O).
    if shift == 1:
        r0, r1 = 1, 2
    else:  # shift == -1
        r0, r1 = -2, -1
    p0, p1 = r0 * N, r1 * N

    # Hoisted index helpers / masks (shared by all sub-batches).
    col = jax.lax.broadcasted_iota(jnp.int32, (1, Wsub), 1)
    c_img = col % ON_pad                    # column index inside one image slot
    n_idx = c_img % N                       # meaningful only for c_img < ON
    keep_left = (n_idx != 0).astype(jnp.float32)        # zero where n == 0
    keep_right = (n_idx != (N - 1)).astype(jnp.float32)  # zero where n == N-1

    # Select masks for the collapsed output rolls (A-roll valid region).
    conds = []
    for p in (p0, p1):
        if p > 0:
            conds.append(c_img >= p)
        else:
            conds.append(c_img < ON + p)

    w_all = w_ref[...]                                   # (K*L, 3*J)
    pad = ON_pad - ON
    zpad = jnp.zeros((J, pad), jnp.float32) if pad else None

    def circ(s, p, cond):
        # Circular roll by p over each ON-wide image segment, using only
        # full-width (128-aligned) rolls: A covers the non-wrapping columns,
        # B covers the wrap region; cond selects between them.
        a = _lane_roll(s, p, roll_mode)
        b = _lane_roll(s, p - ON if p > 0 else p + ON, roll_mode)
        return jnp.where(cond, a, b)

    for s_idx in range(MB // SB):            # fully unrolled (static)
        b0 = s_idx * SB

        # Assemble the center tap for SB images, each padded to ON_pad lanes
        # so image slots (and all roll widths) are vreg-aligned.
        padded = []
        for b in range(SB):
            xb = x_ref[b0 + b]                            # (J, ON)
            if zpad is not None:
                xb = jnp.concatenate([xb, zpad], axis=1)  # (J, ON_pad)
            padded.append(xb)
        center = padded[0] if SB == 1 else jnp.concatenate(padded, axis=1)

        # 3-tap zero-padded conv along n: shifted taps via lane rolls + masks.
        # Wrapped columns land only on n==0 / n==N-1 (or pad) lanes -> masked.
        tm1 = _lane_roll(center, 1, roll_mode) * keep_left     # x[..., n-1]
        tp1 = _lane_roll(center, -1, roll_mode) * keep_right   # x[..., n+1]
        rhs = jnp.concatenate([tm1, center, tp1], axis=0)      # (3J, Wsub)

        # einsum('mjoni,jilk->monlk') for SB images, all (l,k) at once.
        res = jnp.dot(w_all, rhs, preferred_element_type=jnp.float32)  # (2L,Wsub)

        # Fused epilogue: two collapsed o-rolls + pair-sum.
        out_full = circ(res[:L], p0, conds[0]) + circ(res[L:], p1, conds[1])

        for b in range(SB):
            start = b * ON_pad
            o_ref[b0 + b] = out_full[:, start:start + ON].astype(o_ref.dtype)


# ----------------------------------------------------------------------------
# Wrapper.
# ----------------------------------------------------------------------------
def kernel_generated_1_forward(x, w, shift):
    """x: (M, J, O, N) f32 (NCHW layout of the module's input),
    w: (J, 3, L, K) f32, shift: +1 or -1.  Returns (M, L, O, N) f32."""
    M, J, O, N = x.shape
    Jw, I, L, K = w.shape
    assert Jw == J and I == 3 and K == 2
    shift = int(shift)
    assert shift in (1, -1)
    ON = O * N
    ON_pad = ((ON + 127) // 128) * 128

    x2 = x.reshape(M, J, ON)                              # free (contiguous)
    # wt[k*L + l, i*J + j] = w[j, i, l, k]   (tiny one-time transform)
    wt = jnp.transpose(w, (3, 2, 1, 0)).reshape(K * L, 3 * J)

    MB = next(b for b in (8, 4, 2, 1) if M % b == 0)      # images per grid step
    SB = 4 if MB % 4 == 0 else MB                         # images per MXU dot

    roll_mode = _detect_roll_mode()

    kern = functools.partial(_fused_kernel, MB=MB, SB=SB, N=N, ON=ON,
                             ON_pad=ON_pad, L=L, shift=shift,
                             roll_mode=roll_mode)
    out = pl.pallas_call(
        kern,
        out_shape=jax.ShapeDtypeStruct((M, L, ON), jnp.float32),
        grid_spec=pltpu.PrefetchScalarGridSpec(
            num_scalar_prefetch=0,
            grid=(M // MB,),
            in_specs=[
                pl.BlockSpec((MB, J, ON), lambda i: (i, 0, 0)),   # image block
                pl.BlockSpec((K * L, 3 * J), lambda i: (0, 0)),   # full weight
            ],
            out_specs=pl.BlockSpec((MB, L, ON), lambda i: (i, 0, 0)),
        ),
        compiler_params=pltpu.CompilerParams(
            dimension_semantics=("parallel",),
            vmem_limit_bytes=48 * 1024 * 1024,
        ),
    )(x2, wt)
    return out.reshape(M, L, O, N)                        # free (contiguous)


# ----------------------------------------------------------------------------
# Pure-JAX mirror of the torch op sequence, for verification.
# ----------------------------------------------------------------------------
def reference_forward(x, w, shift):
    M, J, O, N = x.shape
    _, _, L, K = w.shape
    xp = jnp.pad(x, ((0, 0), (0, 0), (0, 0), (1, 1)))
    t2 = jnp.stack([xp[..., i:i + N] for i in range(3)], axis=3)   # (M,J,O,3,N)
    t2 = jnp.transpose(t2, (0, 1, 2, 4, 3))                        # (M,J,O,N,3)
    t3 = jnp.einsum('mjoni,jilk->monlk', t2, w)
    t4 = jnp.transpose(t3, (0, 2, 3, 1, 4)).reshape(M, N, L, O * K)
    t4 = jnp.roll(t4, shift, axis=3)
    t4 = t4.reshape(M, N, L, O, K).sum(axis=4)
    t5 = jnp.roll(t4, shift, axis=3)
    return jnp.transpose(t5, (0, 2, 3, 1))                         # (M, L, O, N)


if __name__ == "__main__":
    # Small shapes consistent with the module's structure
    # (original: M=128, J=64, O=N=28, L=128, K=2).
    M, J, O, N, L, K = 2, 8, 8, 8, 16, 2

    key = jax.random.PRNGKey(0)
    kx, kw = jax.random.split(key)
    x = jax.random.normal(kx, (M, J, O, N), dtype=jnp.float32)
    w = jax.random.normal(kw, (J, 3, L, K), dtype=jnp.float32)

    ok = True
    for s in (1, -1):   # the module picks one of these at init; verify both
        y = jax.block_until_ready(kernel_generated_1_forward(x, w, s))
        y_ref = reference_forward(x, w, s)
        if y.shape != (M, L, O, N):
            ok = False
            print(f"BAD SHAPE shift={s}: {y.shape}")
            continue
        err = float(jnp.max(jnp.abs(y - y_ref)))
        if err > 1e-3:
            ok = False
            print(f"MISMATCH shift={s} max_err={err}")
    if ok:
        print("KERNEL_OK")
</pallas_src>

<mosaic_0001>
module attributes {stable_mosaic.version = 11 : i64} {
  func.func @_probe_roll_kernel(%arg0: memref<8x128xf32, #tpu.memory_space<vmem>>, %arg1: memref<8x128xf32, #tpu.memory_space<vmem>>) attributes {dimension_semantics = [], scalar_prefetch = 0 : i64, scratch_operands = 0 : i64, tpu.core_type = #tpu.core_type<tc>} {
    %c0 = arith.constant 0 : index
    %c0_0 = arith.constant 0 : index
    %0 = vector.load %arg0[%c0, %c0_0] : memref<8x128xf32, #tpu.memory_space<vmem>>, vector<8x128xf32>
    %c1_i32 = arith.constant 1 : i32
    %1 = tpu.dynamic_rotate %0 by %c1_i32 dim 1 : vector<8x128xf32>, i32 -> vector<8x128xf32>
    %c0_1 = arith.constant 0 : index
    %c0_2 = arith.constant 0 : index
    %2 = vector.load %arg1[%c0_1, %c0_2] : memref<8x128xf32, #tpu.memory_space<vmem>>, vector<8x128xf32>
    tpu.vector_store %arg1[%c0_1, %c0_2], %1 {strides = array<i32>} : memref<8x128xf32, #tpu.memory_space<vmem>>, vector<8x128xf32>,
    return
  }
}

module attributes {stable_mosaic.version = 11 : i64} {
  func.func @_fused_kernel(%arg0: i32, %arg1: memref<2x8x64xf32, #tpu.memory_space<vmem>>, %arg2: memref<32x24xf32, #tpu.memory_space<vmem>>, %arg3: memref<2x16x64xf32, #tpu.memory_space<vmem>>) attributes {dimension_semantics = [#tpu.dimension_semantics<parallel>], iteration_bounds = array<i64: 1>, scalar_prefetch = 0 : i64, scratch_operands = 0 : i64, tpu.core_type = #tpu.core_type<tc>, window_params = [{transform_indices = @transform_0, window_bounds = array<i64: 2, 8, 64>}, {pipeline_mode = #tpu.pipeline_mode<synchronous>, transform_indices = @transform_1, window_bounds = array<i64: 32, 24>}, {transform_indices = @transform_2, window_bounds = array<i64: 2, 16, 64>}]} {
    %0 = tpu.iota {dimensions = array<i32: 1>} : vector<1x256xi32>
    %c128_i32 = arith.constant 128 : i32
    %c0_i32 = arith.constant 0 : i32
    %1 = arith.cmpi eq, %c128_i32, %c0_i32 : i32
    %c1_i32 = arith.constant 1 : i32
    %2 = arith.select %1, %c1_i32, %c128_i32 : i32
    %3 = vector.broadcast %2 : i32 to vector<1x256xi32>
    %4 = arith.remsi %0, %3 : vector<1x256xi32>
    %c0_i32_0 = arith.constant 0 : i32
    %5 = vector.broadcast %c0_i32_0 : i32 to vector<1x256xi32>
    %6 = arith.cmpi ne, %4, %5 : vector<1x256xi32>
    %c0_i32_1 = arith.constant 0 : i32
    %7 = vector.broadcast %c0_i32_1 : i32 to vector<1x256xi32>
    %8 = arith.cmpi slt, %4, %7 : vector<1x256xi32>
    %c0_i32_2 = arith.constant 0 : i32
    %9 = arith.cmpi slt, %2, %c0_i32_2 : i32
    %10 = vector.broadcast %9 : i1 to vector<1x256xi1>
    %11 = vector.broadcast %10 : vector<1x256xi1> to vector<1x256xi1>
    %12 = arith.xori %8, %11 : vector<1x256xi1>
    %13 = arith.andi %12, %6 : vector<1x256xi1>
    %14 = vector.broadcast %2 : i32 to vector<1x256xi32>
    %15 = arith.addi %4, %14 : vector<1x256xi32>
    %16 = arith.select %13, %15, %4 : vector<1x256xi1>, vector<1x256xi32>
    %c8_i32 = arith.constant 8 : i32
    %c0_i32_3 = arith.constant 0 : i32
    %17 = arith.cmpi eq, %c8_i32, %c0_i32_3 : i32
    %c1_i32_4 = arith.constant 1 : i32
    %18 = arith.select %17, %c1_i32_4, %c8_i32 : i32
    %19 = vector.broadcast %18 : i32 to vector<1x256xi32>
    %20 = arith.remsi %16, %19 : vector<1x256xi32>
    %c0_i32_5 = arith.constant 0 : i32
    %21 = vector.broadcast %c0_i32_5 : i32 to vector<1x256xi32>
    %22 = arith.cmpi ne, %20, %21 : vector<1x256xi32>
    %c0_i32_6 = arith.constant 0 : i32
    %23 = vector.broadcast %c0_i32_6 : i32 to vector<1x256xi32>
    %24 = arith.cmpi slt, %20, %23 : vector<1x256xi32>
    %c0_i32_7 = arith.constant 0 : i32
    %25 = arith.cmpi slt, %18, %c0_i32_7 : i32
    %26 = vector.broadcast %25 : i1 to vector<1x256xi1>
    %27 = vector.broadcast %26 : vector<1x256xi1> to vector<1x256xi1>
    %28 = arith.xori %24, %27 : vector<1x256xi1>
    %29 = arith.andi %28, %22 : vector<1x256xi1>
    %30 = vector.broadcast %18 : i32 to vector<1x256xi32>
    %31 = arith.addi %20, %30 : vector<1x256xi32>
    %32 = arith.select %29, %31, %20 : vector<1x256xi1>, vector<1x256xi32>
    %c0_i32_8 = arith.constant 0 : i32
    %33 = vector.broadcast %c0_i32_8 : i32 to vector<1x256xi32>
    %34 = arith.cmpi ne, %32, %33 : vector<1x256xi32>
    %35 = arith.extui %34 : vector<1x256xi1> to vector<1x256xi32>
    %36 = arith.sitofp %35 : vector<1x256xi32> to vector<1x256xf32>
    %c7_i32 = arith.constant 7 : i32
    %37 = vector.broadcast %c7_i32 : i32 to vector<1x256xi32>
    %38 = arith.cmpi ne, %32, %37 : vector<1x256xi32>
    %39 = arith.extui %38 : vector<1x256xi1> to vector<1x256xi32>
    %40 = arith.sitofp %39 : vector<1x256xi32> to vector<1x256xf32>
    %c8_i32_9 = arith.constant 8 : i32
    %41 = vector.broadcast %c8_i32_9 : i32 to vector<1x256xi32>
    %42 = arith.cmpi sge, %16, %41 : vector<1x256xi32>
    %c16_i32 = arith.constant 16 : i32
    %43 = vector.broadcast %c16_i32 : i32 to vector<1x256xi32>
    %44 = arith.cmpi sge, %16, %43 : vector<1x256xi32>
    %c0 = arith.constant 0 : index
    %c0_10 = arith.constant 0 : index
    %45 = vector.load %arg2[%c0, %c0_10] : memref<32x24xf32, #tpu.memory_space<vmem>>, vector<32x24xf32>
    %cst = arith.constant 0.000000e+00 : f32
    %46 = vector.broadcast %cst : f32 to vector<8x64xf32>
    %c0_11 = arith.constant 0 : index
    %c0_12 = arith.constant 0 : index
    %c0_13 = arith.constant 0 : index
    %47 = vector.load %arg1[%c0_11, %c0_12, %c0_13] : memref<2x8x64xf32, #tpu.memory_space<vmem>>, vector<1x8x64xf32>
    %48 = vector.shape_cast %47 : vector<1x8x64xf32> to vector<8x64xf32>
    %49 = tpu.concatenate %48, %46 in 1 : vector<8x64xf32>, vector<8x64xf32> -> vector<8x128xf32>
    %c1 = arith.constant 1 : index
    %c0_14 = arith.constant 0 : index
    %c0_15 = arith.constant 0 : index
    %50 = vector.load %arg1[%c1, %c0_14, %c0_15] : memref<2x8x64xf32, #tpu.memory_space<vmem>>, vector<1x8x64xf32>
    %51 = vector.shape_cast %50 : vector<1x8x64xf32> to vector<8x64xf32>
    %52 = tpu.concatenate %51, %46 in 1 : vector<8x64xf32>, vector<8x64xf32> -> vector<8x128xf32>
    %53 = tpu.concatenate %49, %52 in 1 : vector<8x128xf32>, vector<8x128xf32> -> vector<8x256xf32>
    %54 = vector.extract_strided_slice %53 {offsets = [0, 255], sizes = [8, 1], strides = [1, 1]} : vector<8x256xf32> to vector<8x1xf32>
    %55 = vector.extract_strided_slice %53 {offsets = [0, 0], sizes = [8, 255], strides = [1, 1]} : vector<8x256xf32> to vector<8x255xf32>
    %56 = tpu.concatenate %54, %55 in 1 : vector<8x1xf32>, vector<8x255xf32> -> vector<8x256xf32>
    %57 = vector.broadcast %36 : vector<1x256xf32> to vector<8x256xf32>
    %58 = arith.mulf %56, %57 : vector<8x256xf32>
    %59 = vector.extract_strided_slice %53 {offsets = [0, 1], sizes = [8, 255], strides = [1, 1]} : vector<8x256xf32> to vector<8x255xf32>
    %60 = vector.extract_strided_slice %53 {offsets = [0, 0], sizes = [8, 1], strides = [1, 1]} : vector<8x256xf32> to vector<8x1xf32>
    %61 = tpu.concatenate %59, %60 in 1 : vector<8x255xf32>, vector<8x1xf32> -> vector<8x256xf32>
    %62 = vector.broadcast %40 : vector<1x256xf32> to vector<8x256xf32>
    %63 = arith.mulf %61, %62 : vector<8x256xf32>
    %64 = tpu.concatenate %58, %53, %63 in 0 : vector<8x256xf32>, vector<8x256xf32>, vector<8x256xf32> -> vector<24x256xf32>
    %cst_16 = arith.constant dense<0.000000e+00> : vector<32x256xf32>
    %65 = tpu.matmul %45, %64, %cst_16 {dimension_numbers = #tpu.dot_dimension_numbers<[1], [0], [0], [1], [0, 0, 1, 1], [], []>} : vector<32x24xf32>, vector<24x256xf32>, vector<32x256xf32> -> vector<32x256xf32>
    %66 = vector.extract_strided_slice %65 {offsets = [0, 0], sizes = [16, 256], strides = [1, 1]} : vector<32x256xf32> to vector<16x256xf32>
    %67 = vector.extract_strided_slice %66 {offsets = [0, 248], sizes = [16, 8], strides = [1, 1]} : vector<16x256xf32> to vector<16x8xf32>
    %68 = vector.extract_strided_slice %66 {offsets = [0, 0], sizes = [16, 248], strides = [1, 1]} : vector<16x256xf32> to vector<16x248xf32>
    %69 = tpu.concatenate %67, %68 in 1 : vector<16x8xf32>, vector<16x248xf32> -> vector<16x256xf32>
    %70 = vector.extract_strided_slice %66 {offsets = [0, 56], sizes = [16, 200], strides = [1, 1]} : vector<16x256xf32> to vector<16x200xf32>
    %71 = vector.extract_strided_slice %66 {offsets = [0, 0], sizes = [16, 56], strides = [1, 1]} : vector<16x256xf32> to vector<16x56xf32>
    %72 = tpu.concatenate %70, %71 in 1 : vector<16x200xf32>, vector<16x56xf32> -> vector<16x256xf32>
    %73 = vector.shape_cast %42 : vector<1x256xi1> to vector<1x256xi1>
    %74 = vector.broadcast %73 : vector<1x256xi1> to vector<16x256xi1>
    %75 = arith.select %74, %69, %72 : vector<16x256xi1>, vector<16x256xf32>
    %76 = vector.extract_strided_slice %65 {offsets = [16, 0], sizes = [16, 256], strides = [1, 1]} : vector<32x256xf32> to vector<16x256xf32>
    %77 = vector.extract_strided_slice %76 {offsets = [0, 240], sizes = [16, 16], strides = [1, 1]} : vector<16x256xf32> to vector<16x16xf32>
    %78 = vector.extract_strided_slice %76 {offsets = [0, 0], sizes = [16, 240], strides = [1, 1]} : vector<16x256xf32> to vector<16x240xf32>
    %79 = tpu.concatenate %77, %78 in 1 : vector<16x16xf32>, vector<16x240xf32> -> vector<16x256xf32>
    %80 = vector.extract_strided_slice %76 {offsets = [0, 48], sizes = [16, 208], strides = [1, 1]} : vector<16x256xf32> to vector<16x208xf32>
    %81 = vector.extract_strided_slice %76 {offsets = [0, 0], sizes = [16, 48], strides = [1, 1]} : vector<16x256xf32> to vector<16x48xf32>
    %82 = tpu.concatenate %80, %81 in 1 : vector<16x208xf32>, vector<16x48xf32> -> vector<16x256xf32>
    %83 = vector.shape_cast %44 : vector<1x256xi1> to vector<1x256xi1>
    %84 = vector.broadcast %83 : vector<1x256xi1> to vector<16x256xi1>
    %85 = arith.select %84, %79, %82 : vector<16x256xi1>, vector<16x256xf32>
    %86 = arith.addf %75, %85 : vector<16x256xf32>
    %87 = vector.extract_strided_slice %86 {offsets = [0, 0], sizes = [16, 64], strides = [1, 1]} : vector<16x256xf32> to vector<16x64xf32>
    %c0_17 = arith.constant 0 : index
    %c0_18 = arith.constant 0 : index
    %c0_19 = arith.constant 0 : index
    %88 = vector.load %arg3[%c0_17, %c0_18, %c0_19] : memref<2x16x64xf32, #tpu.memory_space<vmem>>, vector<1x16x64xf32>
    %89 = vector.shape_cast %88 : vector<1x16x64xf32> to vector<16x64xf32>
    %90 = vector.shape_cast %87 : vector<16x64xf32> to vector<1x16x64xf32>
    tpu.vector_store %arg3[%c0_17, %c0_18, %c0_19], %90 {strides = array<i32>} : memref<2x16x64xf32, #tpu.memory_space<vmem>>, vector<1x16x64xf32>,
    %91 = vector.extract_strided_slice %86 {offsets = [0, 128], sizes = [16, 64], strides = [1, 1]} : vector<16x256xf32> to vector<16x64xf32>
    %c1_20 = arith.constant 1 : index
    %c0_21 = arith.constant 0 : index
    %c0_22 = arith.constant 0 : index
    %92 = vector.load %arg3[%c1_20, %c0_21, %c0_22] : memref<2x16x64xf32, #tpu.memory_space<vmem>>, vector<1x16x64xf32>
    %93 = vector.shape_cast %92 : vector<1x16x64xf32> to vector<16x64xf32>
    %94 = vector.shape_cast %91 : vector<16x64xf32> to vector<1x16x64xf32>
    tpu.vector_store %arg3[%c1_20, %c0_21, %c0_22], %94 {strides = array<i32>} : memref<2x16x64xf32, #tpu.memory_space<vmem>>, vector<1x16x64xf32>,
    return
  }
  func.func @transform_0(%arg0: i32) -> (i32, i32, i32) {
    %c0_i32 = arith.constant 0 : i32
    %c0_i32_0 = arith.constant 0 : i32
    %c0_i32_1 = arith.constant 0 : i32
    return %arg0, %c0_i32, %c0_i32_0 : i32, i32, i32
  }
  func.func @transform_1(%arg0: i32) -> (i32, i32) {
    %c0_i32 = arith.constant 0 : i32
    %c0_i32_0 = arith.constant 0 : i32
    %c0_i32_1 = arith.constant 0 : i32
    return %c0_i32, %c0_i32_0 : i32, i32
  }
  func.func @transform_2(%arg0: i32) -> (i32, i32, i32) {
    %c0_i32 = arith.constant 0 : i32
    %c0_i32_0 = arith.constant 0 : i32
    %c0_i32_1 = arith.constant 0 : i32
    return %arg0, %c0_i32, %c0_i32_0 : i32, i32, i32
  }
}

</mosaic_0001>

<bundles_post_ra>
// kernel: tpu_custom_call.1
= control target key start
LH: loop header
LB: loop body
LE: loop exit
PB: predicated region body
PF: predicated region fallthrough
CT: control target
= control target key end

     0   :  { %6 = vsyncpa [#allocation3], 0  ;;  %s128_s0 = inlined_call_operand.hbm [shape: f32[8,128], index: 0, kind: input, shape index: {}]   ;;  %s129_s1 = inlined_call_operand.hbm [shape: f32[8,128], index: 1, kind: output, shape index: {}]  }
   0x1   :  { %7 = vsyncpa [#allocation4], 0  ;;  %s91_s6 = smov [#allocation2]   ;;  %s43_s10 = scalar_lea.hbm %s128_s0, 128 }
   0x2   :  { %s14_s7 = sshll.u32 %s91_s6, 4  ;;  %p44_p0 = scmp.ne.s32.totalorder %s128_s0, %s43_s10  ;;  %s15_s7 = int_to_ptr.vmem [resolvable:$true] %s14_s7 }
   0x3   :  { %p47_p1 = scmp.lt.u32.totalorder %s43_s10, %s128_s0 }
   0x5   :  { %p49_p2 = pnand %p47_p1, %p44_p0 }
   0x7   :  { %52 = shalt.err (!%p49_p2)
}
   0x8   :  { %s53_s15 = scalar_lea.vmem %s15_s7, 128  ;;  %p58_p4 = scmp.lt.s32.totalorder %s15_s7, %s15_s7 }
   0x9   :  { %p54_p3 = scmp.ne.s32.totalorder %s15_s7, %s53_s15  ;;  %p59_p5 = scmp.lt.s32.totalorder %s53_s15, %s53_s15 }
   0xb   :  { %p60_p6 = por %p59_p5, %p58_p4 }
   0xd   :  { %p61_p7 = pnand %p60_p6, %p54_p3 }
   0xf   :  { %64 = shalt.err (!%p61_p7)
}
  0x10   :  { %17 = dma.hbm_to_vmem [thread:$0]  %s128_s0, 128, %s15_s7, [#allocation3]  }
  0x11   :  { %87 = dma.done.wait [#allocation3], 128  }
  0x12   :  { %88 = vsyncadd [#allocation3], 4294967168  ;;  %v21_v0 = vld [vmem:[#allocation2] sm:$0xff]  ;;  %s92_s18 = smov 1   ;;  %s93_s19 = smov [#allocation5]  }
  0x13   :  { %22 = vrot.lane.b32.xlu0 %v21_v0, %s92_s18  ;;  %s31_s20 = sshll.u32 %s93_s19, 4  ;;  %s32_s20 = int_to_ptr.vmem [resolvable:$true] %s31_s20 }
  0x14   :  { %s65_s21 = scalar_lea.vmem %s32_s20, 128  ;;  %p70_p9 = scmp.lt.s32.totalorder %s32_s20, %s32_s20 }
  0x15   :  { %p66_p8 = scmp.ne.s32.totalorder %s32_s20, %s65_s21  ;;  %p71_p10 = scmp.lt.s32.totalorder %s65_s21, %s65_s21 }
  0x17   :  { %p72_p11 = por %p71_p10, %p70_p9 }
  0x19   :  { %p73_p12 = pnand %p72_p11, %p66_p8 }
  0x85   :  { %v23_v1 = vpop.permute.xlu0 %22 }
  0x86   :  { %24 = vst [vmem:[#allocation5] sm:$0xff] %v23_v1 }
  0x87   :  { %76 = shalt.err (!%p73_p12)
}
  0x88   :  { %s77_s0 = scalar_lea.hbm %s129_s1, 128 }
  0x89   :  { %p78_p13 = scmp.ne.s32.totalorder %s129_s1, %s77_s0  ;;  %p81_p0 = scmp.lt.u32.totalorder %s77_s0, %s129_s1 }
  0x8b   :  { %p83_p1 = pnand %p81_p0, %p78_p13 }
  0x8d   :  { %86 = shalt.err (!%p83_p1)
}
  0x8e   :  { %34 = dma.vmem_to_hbm [thread:$0]  %s32_s20, 128, %s129_s1, [#allocation4]  }
  0x8f   :  { %89 = dma.done.wait [#allocation4], 128  }
  0x90   :  { %90 = vsyncadd [#allocation4], 4294967168 }
  0x91   :  { %38 = vsyncpa [#allocation3], 1 }
  0x92   :  { %39 = vsyncpa [#allocation4], 1 }

// kernel: tpu_custom_call.1
= control target key start
LH: loop header
LB: loop body
LE: loop exit
PB: predicated region body
PF: predicated region fallthrough
CT: control target
= control target key end

     0   :  { %vm84_vm0 = vcmask 523264   ;;  %s507_s0 = inlined_call_operand.vmem [shape: f32[2,8,64], index: 0, kind: input, shape index: {}]   ;;  %s508_s1 = inlined_call_operand.vmem [shape: f32[32,24], index: 1, kind: input, shape index: {}]   ;;  %s509_s2 = inlined_call_operand.hbm [shape: f32[2,16,64], index: 2, kind: output, shape index: {}]  }
   0x1   :  { %v346_v0 = vld [vmem:[%s507_s0 + $0x8] sm:$0xff]  ;;  %v83_v1 = vld [vmem:[%s507_s0] sm:$0xff] }
   0x2   :  { %v88_v2 = vsel %vm84_vm0, %v346_v0, 0.0  ;;  %v85_v3 = vsel %vm84_vm0, %v83_v1, 0.0 }
   0x3   :  { %7 = vsyncpa [#allocation3], 0  ;;  %s397_s13 = smov 1   ;;  %s398_s14 = smov 127   ;;  %v399_v4 = vmov 0.0   ;;  %v12_v5 = vlaneseq  ;;  %vm96_vm3 = vcmask 7168  }
   0x4   :  { %90 = vrot.lane.b32.xlu0 %v88_v2, %s397_s13  ;;  %103 = vrot.lane.b32.xlu1 %v85_v3, %s398_s14  ;;  %vm107_vm4 = vcmask 1039360   ;;  %vm400_vm7 = vmmov 1   ;;  %v79_v29 = vld [vmem:[%s508_s1] sm:$0xff]  ;;  %vm115_vm9 = vcmask 195584   ;;  %v81_v30 = vld [vmem:[%s508_s1 + $0x10] sm:$0xff]  ;;  %s401_s22 = smov 8  }
   0x5   :  { %192 = vmatprep.mubr.f32.mxu0 %v399_v4  ;;  %204 = vmatprep.mubr.f32.mxu1 %v399_v4  ;;  %v430_v6 = vand.u32 127, %v12_v5  ;;  %vm354_vm8 = vmpackc.low %vm84_vm0, %vm400_vm7  ;;  %v80_v31 = vld [vmem:[%s508_s1 + $0x8] sm:$0xff]  ;;  %v82_v32 = vld [vmem:[%s508_s1 + $0x18] sm:$0xff]  ;;  %s402_s23 = smov 72   ;;  %s403_s24 = smov 80   ;;  %vm231_vm10 = vcmask 64512  }
   0x6   :  { %s404_s25 = smov 16   ;;  %vm248_vm11 = vcmask 588800   ;;  %vm298_vm12 = vcmask 654336   ;;  %vm281_vm15 = vcmask 130048   ;;  %s405_s1 = smov [#allocation2]  }
   0x7   :  { %v14_v7 = vadd.s32 128, %v430_v6  ;;  %v43_v9 = vand.u32 7, %v430_v6  ;;  %vm75_vm13 = vcmp.ge.s32.totalorder %v430_v6, 8  ;;  %s331_s26 = sshll.u32 %s405_s1, 4  ;;  %s332_s26 = int_to_ptr.vmem [resolvable:$true] %s331_s26 }
   0x8   :  { %94 = vrot.lane.b32.xlu0 %v85_v3, %s397_s13  ;;  %105 = vrot.lane.b32.xlu1 %v88_v2, %s398_s14  ;;  %s373_s27 = scalar_lea.vmem %s332_s26, 512  ;;  %p378_p1 = scmp.lt.s32.totalorder %s332_s26, %s332_s26 }
   0x9   :  { %v433_v8 = vand.u32 127, %v14_v7  ;;  %vm63_vm1 = vcmp.ne.s32.totalorder %v43_v9, 0  ;;  %vm69_vm6 = vcmp.ne.s32.totalorder %v43_v9, 7  ;;  %p374_p0 = scmp.ne.s32.totalorder %s332_s26, %s373_s27  ;;  %p379_p2 = scmp.lt.s32.totalorder %s373_s27, %s373_s27 }
   0xa   :  { %v342_v13 = vsel %vm63_vm1, 1.0, %v399_v4  ;;  %v344_v25 = vsel %vm69_vm6, 1.0, %v399_v4  ;;  %vm77_vm1 = vcmp.ge.s32.totalorder %v430_v6, 16 }
   0xb   :  { %v50_v10 = vand.u32 7, %v433_v8  ;;  %vm76_vm14 = vcmp.ge.s32.totalorder %v433_v8, 8  ;;  %p380_p3 = por %p379_p2, %p378_p1 }
   0xd   :  { %vm64_vm2 = vcmp.ne.s32.totalorder %v50_v10, 0  ;;  %vm70_vm5 = vcmp.ne.s32.totalorder %v50_v10, 7  ;;  %p381_p4 = pnand %p380_p3, %p374_p0 }
   0xe   :  { %v343_v14 = vsel %vm64_vm2, 1.0, %v399_v4  ;;  %v345_v21 = vsel %vm70_vm5, 1.0, %v399_v4  ;;  %vm78_vm2 = vcmp.ge.s32.totalorder %v433_v8, 16 }
  0x76   :  { %v91_v11 = vpop.permute.xlu0 %90  ;;  %v104_v12 = vpop.permute.xlu1 %103 }
  0x7a   :  { %v95_v15 = vpop.permute.xlu0 %94  ;;  %v106_v16 = vpop.permute.xlu1 %105 }
  0x7b   :  { %v97_v17 = vsel %vm96_vm3, %v95_v15, %v91_v11  ;;  %v100_v18 = vsel %vm96_vm3, %v91_v11, %v95_v15  ;;  %v112_v22 = vsel %vm107_vm4, %v106_v16, %v104_v12  ;;  %v108_v26 = vsel %vm107_vm4, %v104_v12, %v106_v16 }
  0x7c   :  { %v101_v19 = vmul.f32 %v342_v13, %v100_v18  ;;  %v102_v20 = vmul.f32 %v343_v14, %v97_v17  ;;  %v114_v27 = vmul.f32 %v345_v21, %v112_v22  ;;  %v113_v28 = vmul.f32 %v344_v25, %v108_v26 }
  0x7e   :  { %v353_v23 = vpack.c.bf16 %v346_v0, %v102_v20  ;;  %v356_v24 = vpack.c.bf16 %v83_v1, %v101_v19 }
  0x80   :  { %355 = vmatprep.subr.msk.bf16.mxu0 %vm354_vm8, %v353_v23  ;;  %359 = vmatprep.subr.msk.bf16.mxu1 %vm354_vm8, %v353_v23 }
  0x81   :  { %358 = vmatpush1.bf16.msk.msra.mxu0 %vm354_vm8, %v356_v24  ;;  %361 = vmatpush1.bf16.msk.msra.mxu1 %vm354_vm8, %v356_v24 }
  0x82   :  { %132 = vmatprep.subr.mxu0 %v114_v27  ;;  %360 = vmatprep.subr.mxu1 %v114_v27 }
  0x85   :  { %133 = vmatpush1.msra.mxu0 %v113_v28  ;;  %362 = vmatpush1.msra.mxu1 %v113_v28 }
  0x86   :  { %349 = vmatmul.mubr.msk.f32.vlgmr.msra.gmra.mrb[0].mxu0 %vm115_vm9, %v79_v29  ;;  %351 = vmatmul.mubr.msk.f32.vlgmr.msra.gmra.mrb[0].mxu1 %vm115_vm9, %v81_v30 }
  0x87   :  { %198 = vmatprep.mubr.f32.mxu0 %v399_v4  ;;  %210 = vmatprep.mubr.f32.mxu1 %v399_v4 }
  0x8a   :  { %350 = vmatmul.mubr.msk.f32.gmra.mrb[2].mxu0 %vm115_vm9, %v80_v31  ;;  %352 = vmatmul.mubr.msk.f32.gmra.mrb[2].mxu1 %vm115_vm9, %v82_v32 }
 0x159   :  { %v194_v33 = vpop.f32.mrb[0].mxu0  ;;  %v206_v34 = vpop.f32.mrb[0].mxu1 }
 0x15a   :  { %227 = vrot.lane.b32.xlu0 %v194_v33, %s401_s22  ;;  %v196_v35 = vpop.f32.mrb[1].mxu0  ;;  %v208_v36 = vpop.f32.mrb[1].mxu1 }
 0x15b   :  { %242 = vrot.lane.b32.xlu1 %v196_v35, %s402_s23 }
 0x15d   :  { %v200_v37 = vpop.f32.mrb[2].mxu0  ;;  %v212_v38 = vpop.f32.mrb[2].mxu1 }
 0x15e   :  { %240 = vrot.lane.b32.xlu0 %v194_v33, %s402_s23  ;;  %v202_v39 = vpop.f32.mrb[3].mxu0  ;;  %v214_v40 = vpop.f32.mrb[3].mxu1 }
 0x15f   :  { %292 = vrot.lane.b32.xlu1 %v208_v36, %s403_s24 }
 0x162   :  { %277 = vrot.lane.b32.xlu0 %v206_v34, %s404_s25 }
 0x163   :  { %229 = vrot.lane.b32.xlu1 %v200_v37, %s401_s22 }
 0x166   :  { %290 = vrot.lane.b32.xlu0 %v206_v34, %s403_s24 }
 0x167   :  { %279 = vrot.lane.b32.xlu1 %v212_v38, %s404_s25 }
 0x16a   :  { %219 = vrot.lane.b32.xlu0 %v196_v35, %s401_s22 }
 0x16b   :  { %221 = vrot.lane.b32.xlu1 %v202_v39, %s401_s22 }
 0x16e   :  { %269 = vrot.lane.b32.xlu0 %v208_v36, %s404_s25 }
 0x16f   :  { %246 = vrot.lane.b32.xlu1 %v202_v39, %s402_s23 }
 0x172   :  { %244 = vrot.lane.b32.xlu0 %v200_v37, %s402_s23 }
 0x173   :  { %271 = vrot.lane.b32.xlu1 %v214_v40, %s404_s25 }
 0x176   :  { %294 = vrot.lane.b32.xlu0 %v212_v38, %s403_s24 }
 0x177   :  { %296 = vrot.lane.b32.xlu1 %v214_v40, %s403_s24 }
 0x1cc   :  { %v228_v41 = vpop.permute.xlu0 %227 }
 0x1cd   :  { %v243_v42 = vpop.permute.xlu1 %242 }
 0x1d0   :  { %v241_v43 = vpop.permute.xlu0 %240 }
 0x1d1   :  { %v293_v44 = vpop.permute.xlu1 %292  ;;  %v249_v53 = vsel %vm248_vm11, %v241_v43, %v243_v42  ;;  %v257_v54 = vsel %vm248_vm11, %v243_v42, %v241_v43 }
 0x1d4   :  { %v278_v45 = vpop.permute.xlu0 %277 }
 0x1d5   :  { %v230_v46 = vpop.permute.xlu1 %229 }
 0x1d8   :  { %v291_v47 = vpop.permute.xlu0 %290 }
 0x1d9   :  { %v280_v48 = vpop.permute.xlu1 %279  ;;  %v299_v56 = vsel %vm298_vm12, %v291_v47, %v293_v44  ;;  %v307_v57 = vsel %vm298_vm12, %v293_v44, %v291_v47 }
 0x1dc   :  { %v220_v49 = vpop.permute.xlu0 %219 }
 0x1dd   :  { %v222_v50 = vpop.permute.xlu1 %221  ;;  %v232_v51 = vsel %vm231_vm10, %v228_v41, %v220_v49  ;;  %v238_v52 = vsel %vm231_vm10, %v220_v49, %v228_v41 }
 0x1de   :  { %v263_v61 = vsel %vm75_vm13, %v238_v52, %v249_v53  ;;  %v264_v62 = vsel %vm76_vm14, %v232_v51, %v257_v54  ;;  %v233_v10 = vsel %vm231_vm10, %v230_v46, %v222_v50  ;;  %v239_v11 = vsel %vm231_vm10, %v222_v50, %v230_v46 }
 0x1e0   :  { %v270_v55 = vpop.permute.xlu0 %269 }
 0x1e1   :  { %v282_v58 = vsel %vm281_vm15, %v278_v45, %v270_v55  ;;  %v288_v59 = vsel %vm281_vm15, %v270_v55, %v278_v45  ;;  %v247_v60 = vpop.permute.xlu1 %246 }
 0x1e2   :  { %v313_v63 = vsel %vm77_vm1, %v288_v59, %v299_v56  ;;  %v314_v0 = vsel %vm78_vm2, %v282_v58, %v307_v57 }
 0x1e3   :  { %v317_v1 = vadd.f32 %v313_v63, %v263_v61  ;;  %v318_v2 = vadd.f32 %v314_v0, %v264_v62 }
 0x1e4   :  { %v245_v3 = vpop.permute.xlu0 %244 }
 0x1e5   :  { %321 = vst.msk [vmem:[#allocation2] sm:$0xff] %vm84_vm0, %v317_v1  ;;  %324 = vst.msk [vmem:[#allocation2 + $0x10] sm:$0xff] %vm84_vm0, %v318_v2  ;;  %v272_v4 = vpop.permute.xlu1 %271  ;;  %v250_v5 = vsel %vm248_vm11, %v245_v3, %v247_v60  ;;  %v258_v7 = vsel %vm248_vm11, %v247_v60, %v245_v3 }
 0x1e6   :  { %v283_v13 = vsel %vm281_vm15, %v280_v48, %v272_v4  ;;  %v289_v14 = vsel %vm281_vm15, %v272_v4, %v280_v48  ;;  %v265_v17 = vsel %vm75_vm13, %v239_v11, %v250_v5  ;;  %v266_v18 = vsel %vm76_vm14, %v233_v10, %v258_v7 }
 0x1e8   :  { %v295_v9 = vpop.permute.xlu0 %294 }
 0x1e9   :  { %v297_v12 = vpop.permute.xlu1 %296 }
 0x1ea   :  { %v300_v15 = vsel %vm298_vm12, %v295_v9, %v297_v12  ;;  %v308_v16 = vsel %vm298_vm12, %v297_v12, %v295_v9 }
 0x1eb   :  { %v315_v19 = vsel %vm77_vm1, %v289_v14, %v300_v15  ;;  %v316_v20 = vsel %vm78_vm2, %v283_v13, %v308_v16 }
 0x1ec   :  { %v319_v21 = vadd.f32 %v315_v19, %v265_v17  ;;  %v320_v22 = vadd.f32 %v316_v20, %v266_v18 }
 0x1ee   :  { %322 = vst.msk [vmem:[#allocation2 + $0x8] sm:$0xff] %vm84_vm0, %v319_v21  ;;  %325 = vst.msk [vmem:[#allocation2 + $0x18] sm:$0xff] %vm84_vm0, %v320_v22 }
 0x1ef   :  { %384 = shalt.err (!%p381_p4)
}
 0x1f0   :  { %s385_s30 = scalar_lea.hbm %s509_s2, 512 }
 0x1f1   :  { %p386_p5 = scmp.ne.s32.totalorder %s509_s2, %s385_s30  ;;  %p389_p6 = scmp.lt.u32.totalorder %s385_s30, %s509_s2 }
 0x1f3   :  { %p391_p7 = pnand %p389_p6, %p386_p5 }
 0x1f5   :  { %394 = shalt.err (!%p391_p7)
}
 0x1f6   :  { %s406_s7 = smov 128  }
 0x1f7   :  { %337 = dma.vmem_to_hbm [thread:$0]  %s332_s26, 512, %s509_s2, [#allocation3], %s406_s7, %s406_s7, %s401_s22  }
 0x1f8   :  { %395 = dma.done.wait [#allocation3], 512  }
 0x1f9   :  { %396 = vsyncadd [#allocation3], 4294966784 }
 0x1fa   :  { %341 = vsyncpa [#allocation3], 1 }

</bundles_post_ra>
